<compile_context>
chip_gen: v7x
topology: tpu7x:2x2x1
jax: 0.10.0
libtpu: 0.0.40
codegen_flags: <defaults>
</compile_context>

<pallas_src>
import functools

import jax
import jax.numpy as jnp
from jax.experimental import pallas as pl
from jax.experimental.pallas import tpu as pltpu


# --------------------------------------------------------------------------- #
# Helpers
# --------------------------------------------------------------------------- #
def _round_up(x: int, m: int) -> int:
    return ((x + m - 1) // m) * m


def _largest_divisor_leq(n: int, cap: int) -> int:
    cap = max(1, min(n, cap))
    for d in range(cap, 0, -1):
        if n % d == 0:
            return d
    return 1


def _vmem_capacity_bytes() -> int:
    try:
        info = pltpu.get_tpu_info()
        cap = getattr(info, "vmem_capacity_bytes", None)
        if cap:
            return int(cap)
    except Exception:
        pass
    return 64 * 1024 * 1024  # conservative default (v7x per-TensorCore VMEM)


# --------------------------------------------------------------------------- #
# Kernels
# --------------------------------------------------------------------------- #
def _attn_fast_kernel(q_ref, k_ref, ctx_ref, score_ref, *,
                      lk_real, lk_pad, approx_recip, matmul_dtype):
    # q_ref:     (BT, TQ, Hp)   query tile (BT batch elems folded)
    # k_ref:     (BT, Lkp, Hp)  full (padded) key == value rows
    # ctx_ref:   (BT, TQ, Hp)
    # score_ref: (BT, TQ, Lkp)
    q = q_ref[...]
    k = k_ref[...]
    if matmul_dtype is not None:
        q = q.astype(matmul_dtype)
        k = k.astype(matmul_dtype)

    # scores[b,i,j] = sum_h q[b,i,h] * k[b,j,h]  (contract H directly, no k.T)
    s = jax.lax.dot_general(
        q, k,
        dimension_numbers=(((2,), (2,)), ((0,), (0,))),
        preferred_element_type=jnp.float32)                 # (BT, TQ, Lkp) f32

    if lk_real < lk_pad:                                    # mask padded keys
        col = jax.lax.broadcasted_iota(jnp.int32, s.shape, 2)
        s = jnp.where(col < lk_real, s, -jnp.inf)

    m = jnp.max(s, axis=-1, keepdims=True)
    e = jnp.exp(s - m)
    denom = jnp.sum(e, axis=-1, keepdims=True)
    if approx_recip:
        inv = pl.reciprocal(denom, approx=True)             # EUP vrcp slot
    else:
        inv = 1.0 / denom                                   # per-row divide only
    p = e * inv                                             # bulk work on VALU

    ctx = jax.lax.dot_general(
        p.astype(k.dtype), k,
        dimension_numbers=(((2,), (1,)), ((0,), (0,))),
        preferred_element_type=jnp.float32)                 # (BT, TQ, Hp) f32

    ctx_ref[...] = ctx.astype(ctx_ref.dtype)
    score_ref[...] = p.astype(score_ref.dtype)


def _attn_kv_tiled_kernel(q_ref, k_ref, ctx_ref, score_ref,
                          m_sc, l_sc, acc_sc, *,
                          lk_real, lk_pad, tk, approx_recip, matmul_dtype):
    # Grid: (batch, q-tiles, kv-tiles); kv axis is "arbitrary" (reduction).
    # ctx_ref / score_ref blocks are revisited along the kv axis (resident).
    ki = pl.program_id(2)
    nk = pl.num_programs(2)

    @pl.when(ki == 0)
    def _():
        m_sc[...] = jnp.full_like(m_sc, -jnp.inf)
        l_sc[...] = jnp.zeros_like(l_sc)
        acc_sc[...] = jnp.zeros_like(acc_sc)
        score_ref[...] = jnp.zeros_like(score_ref)

    q = q_ref[...]
    k = k_ref[...]
    if matmul_dtype is not None:
        q = q.astype(matmul_dtype)
        k = k.astype(matmul_dtype)

    s = jax.lax.dot_general(
        q, k,
        dimension_numbers=(((2,), (2,)), ((0,), (0,))),
        preferred_element_type=jnp.float32)                 # (1, TQ, TK) f32

    if lk_real < lk_pad:
        col = ki * tk + jax.lax.broadcasted_iota(jnp.int32, s.shape, 2)
        s = jnp.where(col < lk_real, s, -jnp.inf)

    m_prev = m_sc[...]
    m_new = jnp.maximum(m_prev, jnp.max(s, axis=-1, keepdims=True))
    alpha = jnp.exp(m_prev - m_new)
    e = jnp.exp(s - m_new)
    l_sc[...] = alpha * l_sc[...] + jnp.sum(e, axis=-1, keepdims=True)
    acc_sc[...] = alpha * acc_sc[...] + jax.lax.dot_general(
        e.astype(k.dtype), k,
        dimension_numbers=(((2,), (1,)), ((0,), (0,))),
        preferred_element_type=jnp.float32)
    m_sc[...] = m_new

    # Rescale previously written (unnormalized) score columns to the new max,
    # then write this kv block's unnormalized probabilities.
    score_ref[...] = (score_ref[...].astype(jnp.float32) * alpha
                      ).astype(score_ref.dtype)
    start = pl.multiple_of(ki * tk, tk)
    score_ref[:, :, pl.ds(start, tk)] = e.astype(score_ref.dtype)

    @pl.when(ki == nk - 1)
    def _():
        denom = l_sc[...]
        if approx_recip:
            inv = pl.reciprocal(denom, approx=True)
        else:
            inv = 1.0 / denom
        ctx_ref[...] = (acc_sc[...] * inv).astype(ctx_ref.dtype)
        score_ref[...] = (score_ref[...].astype(jnp.float32) * inv
                          ).astype(score_ref.dtype)


# --------------------------------------------------------------------------- #
# Wrapper
# --------------------------------------------------------------------------- #
def attention_forward(query, key, *,
                      score_dtype=None,
                      matmul_dtype=None,
                      approx_reciprocal=False,
                      max_key_block_bytes=8 * 1024 * 1024):
    """Pallas equivalent of Attention.forward(query, key) -> (context, Attscore)."""
    B, Lq, H = query.shape
    Bk, Lk, Hk = key.shape
    assert B == Bk and H == Hk, "query/key batch & hidden dims must match"

    if score_dtype is None:
        score_dtype = query.dtype          # match PyTorch dtype contract
    out_dtype = query.dtype
    in_bytes = jnp.dtype(query.dtype).itemsize
    out_bytes = jnp.dtype(out_dtype).itemsize
    score_bytes = jnp.dtype(score_dtype).itemsize

    vmem_cap = _vmem_capacity_bytes()
    budget = int(0.70 * vmem_cap)           # ~44 MiB on v7x, ~90 MiB on v5e/v6e
    big_vmem = vmem_cap >= 96 * 1024 * 1024

    # ---- lane-dense padding (last dims -> x128, sublane -> x8) --------------
    Hp = _round_up(H, 128)
    Lkp = _round_up(Lk, 128)
    tq_cap = 512 if big_vmem else 256       # bigger tiles only where VMEM allows
    if _round_up(Lq, 8) <= tq_cap:
        TQ = _round_up(Lq, 8)
        Lqp = TQ
    else:
        TQ = tq_cap
        Lqp = _round_up(Lq, TQ)

    # ---- path selection ------------------------------------------------------
    key_block_bytes = Lkp * Hp * in_bytes
    use_kv_tiling = key_block_bytes > max_key_block_bytes

    # ---- batch folding (fast path only, tiny per-example work) --------------
    BT = 1
    if not use_kv_tiling and TQ == Lqp:
        bt_rows = max(1, 256 // max(TQ, 1))                  # ~128-512 rows/step
        bt_grid = max(1, B // 4)                             # >= 4 batch steps
        bt_vmem = max(1, (4 * 1024 * 1024) // max(1, key_block_bytes))
        BT = _largest_divisor_leq(B, min(B, bt_rows, bt_grid, bt_vmem))

    def _fast_need(bt, tq):
        blk_q = 2 * bt * tq * Hp * in_bytes                  # double-buffered
        blk_k = 1 * bt * Lkp * Hp * in_bytes                 # single-buffered key
        blk_ctx = 2 * bt * tq * Hp * out_bytes
        blk_sco = 2 * bt * tq * Lkp * score_bytes
        interm = bt * tq * Lkp * 4 * 3 + bt * tq * Hp * 4    # s/e/p + ctx f32
        return blk_q + blk_k + blk_ctx + blk_sco + interm

    if not use_kv_tiling:
        while _fast_need(BT, TQ) > budget:
            if BT > 1:
                BT = _largest_divisor_leq(B, BT - 1)
            elif TQ > 128 and TQ % 2 == 0 and Lqp % (TQ // 2) == 0:
                TQ //= 2
            else:
                use_kv_tiling = True
                break

    TK = 128
    if use_kv_tiling:
        BT = 1
        tk_byte_cap = max(max_key_block_bytes, 128 * Hp * in_bytes)
        for cand in (512, 256, 128):
            if (Lkp % cand == 0
                    and cand * Hp * in_bytes <= min(tk_byte_cap, 4 * 1024 * 1024)):
                TK = cand
                break

        def _kv_need(tq, tk):
            blk_q = 2 * tq * Hp * in_bytes
            blk_k = 2 * tk * Hp * in_bytes
            blk_ctx = 2 * tq * Hp * out_bytes
            blk_sco = 2 * tq * Lkp * score_bytes
            scratch = tq * Hp * 4 + 2 * tq * 4
            interm = tq * tk * 4 * 2 + tq * Lkp * 4
            return blk_q + blk_k + blk_ctx + blk_sco + scratch + interm

        while _kv_need(TQ, TK) > budget:
            if TK > 128:
                TK //= 2
            elif TQ > 128 and TQ % 2 == 0 and Lqp % (TQ // 2) == 0:
                TQ //= 2
            else:
                break  # best effort

    # ---- pad inputs ----------------------------------------------------------
    if Lqp != Lq or Hp != H:
        q_p = jnp.pad(query, ((0, 0), (0, Lqp - Lq), (0, Hp - H)))
    else:
        q_p = query
    if Lkp != Lk or Hp != H:
        k_p = jnp.pad(key, ((0, 0), (0, Lkp - Lk), (0, Hp - H)))
    else:
        k_p = key

    cost = pl.CostEstimate(
        flops=4 * B * Lq * Lk * H,
        transcendentals=B * Lq * Lk,
        bytes_accessed=(B * Lq * H * in_bytes + B * Lk * H * in_bytes
                        + B * Lq * H * out_bytes + B * Lq * Lk * score_bytes),
    )

    out_shapes = (
        jax.ShapeDtypeStruct((B, Lqp, Hp), out_dtype),
        jax.ShapeDtypeStruct((B, Lqp, Lkp), score_dtype),
    )

    if not use_kv_tiling:
        grid = (B // BT, Lqp // TQ)
        kernel = functools.partial(
            _attn_fast_kernel, lk_real=Lk, lk_pad=Lkp,
            approx_recip=approx_reciprocal, matmul_dtype=matmul_dtype)
        grid_spec = pltpu.PrefetchScalarGridSpec(
            num_scalar_prefetch=0,
            grid=grid,
            in_specs=[
                pl.BlockSpec((BT, TQ, Hp), lambda bi, qi: (bi, qi, 0)),
                pl.BlockSpec((BT, Lkp, Hp), lambda bi, qi: (bi, 0, 0),
                             pipeline_mode=pl.Buffered(1)),   # revisited along qi
            ],
            out_specs=[
                pl.BlockSpec((BT, TQ, Hp), lambda bi, qi: (bi, qi, 0)),
                pl.BlockSpec((BT, TQ, Lkp), lambda bi, qi: (bi, qi, 0)),
            ],
        )
        dims = ("parallel", "parallel")
    else:
        grid = (B, Lqp // TQ, Lkp // TK)
        kernel = functools.partial(
            _attn_kv_tiled_kernel, lk_real=Lk, lk_pad=Lkp, tk=TK,
            approx_recip=approx_reciprocal, matmul_dtype=matmul_dtype)
        grid_spec = pltpu.PrefetchScalarGridSpec(
            num_scalar_prefetch=0,
            grid=grid,
            in_specs=[
                pl.BlockSpec((1, TQ, Hp), lambda bi, qi, ki: (bi, qi, 0)),
                pl.BlockSpec((1, TK, Hp), lambda bi, qi, ki: (bi, ki, 0)),
            ],
            out_specs=[
                pl.BlockSpec((1, TQ, Hp), lambda bi, qi, ki: (bi, qi, 0)),
                pl.BlockSpec((1, TQ, Lkp), lambda bi, qi, ki: (bi, qi, 0)),
            ],
            scratch_shapes=[
                pltpu.VMEM((1, TQ, 1), jnp.float32),    # running max
                pltpu.VMEM((1, TQ, 1), jnp.float32),    # running sum
                pltpu.VMEM((1, TQ, Hp), jnp.float32),   # context accumulator
            ],
        )
        dims = ("parallel", "parallel", "arbitrary")

    ctx_p, score_p = pl.pallas_call(
        kernel,
        out_shape=out_shapes,
        grid_spec=grid_spec,
        compiler_params=pltpu.CompilerParams(
            dimension_semantics=dims,
            vmem_limit_bytes=budget,
        ),
        cost_estimate=cost,
    )(q_p, k_p)

    context = ctx_p[:, :Lq, :H]
    att_score = score_p[:, :Lq, :Lk]
    return context, att_score


# --------------------------------------------------------------------------- #
# Self-test
# --------------------------------------------------------------------------- #
if __name__ == "__main__":
    def reference(q, k):
        s = jnp.einsum("bqh,bkh->bqk", q, k, precision=jax.lax.Precision.HIGHEST)
        p = jax.nn.softmax(s, axis=2)
        ctx = jnp.einsum("bqk,bkh->bqh", p, k, precision=jax.lax.Precision.HIGHEST)
        return ctx, p

    # Shapes consistent with a seq2seq decoder attention step:
    # query = decoder outputs (B, Lq, H), key = encoder hidden states (B, Lk, H)
    B, Lq, Lk, H = 2, 8, 8, 32
    k0, k1, k2, k3 = jax.random.split(jax.random.PRNGKey(0), 4)
    query = jax.random.normal(k0, (B, Lq, H), dtype=jnp.float32)
    key = jax.random.normal(k1, (B, Lk, H), dtype=jnp.float32)

    context, att_score = attention_forward(query, key)
    jax.block_until_ready((context, att_score))

    ref_ctx, ref_p = reference(query, key)
    assert context.shape == (B, Lq, H) and att_score.shape == (B, Lq, Lk)
    assert jnp.allclose(context, ref_ctx, atol=2e-5, rtol=2e-5), "context mismatch"
    assert jnp.allclose(att_score, ref_p, atol=2e-5, rtol=2e-5), "score mismatch"
    assert jnp.allclose(jnp.sum(att_score, axis=2), 1.0, atol=1e-5), "rows != 1"

    # Also exercise the Lk-tiled online-softmax path by forcing a small
    # key-block budget (still small shapes).
    B2, Lq2, Lk2, H2 = 1, 16, 256, 128
    q2 = jax.random.normal(k2, (B2, Lq2, H2), dtype=jnp.float32)
    kk2 = jax.random.normal(k3, (B2, Lk2, H2), dtype=jnp.float32)
    ctx2, p2 = attention_forward(q2, kk2, max_key_block_bytes=64 * 1024)
    jax.block_until_ready((ctx2, p2))
    rctx2, rp2 = reference(q2, kk2)
    assert jnp.allclose(ctx2, rctx2, atol=1e-4, rtol=1e-4), "tiled context mismatch"
    assert jnp.allclose(p2, rp2, atol=1e-4, rtol=1e-4), "tiled score mismatch"

    print("KERNEL_OK")
</pallas_src>

<mosaic_0001>
module attributes {stable_mosaic.version = 11 : i64} {
  func.func @_attn_fast_kernel(%arg0: i32, %arg1: i32, %arg2: memref<1x8x128xf32, #tpu.memory_space<vmem>>, %arg3: memref<1x128x128xf32, #tpu.memory_space<vmem>>, %arg4: memref<1x8x128xf32, #tpu.memory_space<vmem>>, %arg5: memref<1x8x128xf32, #tpu.memory_space<vmem>>) attributes {dimension_semantics = [#tpu.dimension_semantics<parallel>, #tpu.dimension_semantics<parallel>], iteration_bounds = array<i64: 2, 1>, scalar_prefetch = 0 : i64, scratch_operands = 0 : i64, tpu.core_type = #tpu.core_type<tc>, window_params = [{transform_indices = @transform_0, window_bounds = array<i64: 1, 8, 128>}, {pipeline_mode = #tpu.pipeline_mode<synchronous>, transform_indices = @transform_1, window_bounds = array<i64: 1, 128, 128>}, {transform_indices = @transform_2, window_bounds = array<i64: 1, 8, 128>}, {transform_indices = @transform_3, window_bounds = array<i64: 1, 8, 128>}]} {
    %c0 = arith.constant 0 : index
    %c0_0 = arith.constant 0 : index
    %c0_1 = arith.constant 0 : index
    %0 = vector.load %arg2[%c0, %c0_0, %c0_1] : memref<1x8x128xf32, #tpu.memory_space<vmem>>, vector<1x8x128xf32>
    %c0_2 = arith.constant 0 : index
    %c0_3 = arith.constant 0 : index
    %c0_4 = arith.constant 0 : index
    %1 = vector.load %arg3[%c0_2, %c0_3, %c0_4] : memref<1x128x128xf32, #tpu.memory_space<vmem>>, vector<1x128x128xf32>
    %cst = arith.constant dense<0.000000e+00> : vector<1x8x128xf32>
    %2 = tpu.matmul %0, %1, %cst {dimension_numbers = #tpu.dot_dimension_numbers<[2], [2], [1], [1], [0, 0, 0, 1, 1, 1], [0], [0]>} : vector<1x8x128xf32>, vector<1x128x128xf32>, vector<1x8x128xf32> -> vector<1x8x128xf32>
    %3 = tpu.iota {dimensions = array<i32: 2>} : vector<1x8x128xi32>
    %c8_i32 = arith.constant 8 : i32
    %4 = vector.broadcast %c8_i32 : i32 to vector<1x8x128xi32>
    %5 = arith.cmpi slt, %3, %4 : vector<1x8x128xi32>
    %cst_5 = arith.constant 0xFF800000 : f32
    %6 = vector.broadcast %cst_5 : f32 to vector<1x8x128xf32>
    %7 = arith.select %5, %2, %6 : vector<1x8x128xi1>, vector<1x8x128xf32>
    %cst_6 = arith.constant dense<0xFF800000> : vector<1x8xf32>
    %8 = vector.multi_reduction <maximumf>, %7, %cst_6 [2] : vector<1x8x128xf32> to vector<1x8xf32>
    %9 = vector.shape_cast %8 : vector<1x8xf32> to vector<1x8x1xf32>
    %10 = vector.broadcast %9 : vector<1x8x1xf32> to vector<1x8x128xf32>
    %11 = arith.subf %7, %10 : vector<1x8x128xf32>
    %12 = math.exp %11 : vector<1x8x128xf32>
    %cst_7 = arith.constant dense<0.000000e+00> : vector<1x8xf32>
    %13 = vector.multi_reduction <add>, %12, %cst_7 [2] : vector<1x8x128xf32> to vector<1x8xf32>
    %14 = vector.shape_cast %13 : vector<1x8xf32> to vector<1x8x1xf32>
    %cst_8 = arith.constant 1.000000e+00 : f32
    %15 = vector.broadcast %cst_8 : f32 to vector<1x8x1xf32>
    %16 = arith.divf %15, %14 : vector<1x8x1xf32>
    %17 = vector.broadcast %16 : vector<1x8x1xf32> to vector<1x8x128xf32>
    %18 = arith.mulf %12, %17 : vector<1x8x128xf32>
    %cst_9 = arith.constant dense<0.000000e+00> : vector<1x8x128xf32>
    %19 = tpu.matmul %18, %1, %cst_9 {dimension_numbers = #tpu.dot_dimension_numbers<[2], [1], [1], [2], [0, 0, 0, 1, 1, 2], [0], [0]>} : vector<1x8x128xf32>, vector<1x128x128xf32>, vector<1x8x128xf32> -> vector<1x8x128xf32>
    %c0_10 = arith.constant 0 : index
    %c0_11 = arith.constant 0 : index
    %c0_12 = arith.constant 0 : index
    %20 = vector.load %arg4[%c0_10, %c0_11, %c0_12] : memref<1x8x128xf32, #tpu.memory_space<vmem>>, vector<1x8x128xf32>
    tpu.vector_store %arg4[%c0_10, %c0_11, %c0_12], %19 {strides = array<i32>} : memref<1x8x128xf32, #tpu.memory_space<vmem>>, vector<1x8x128xf32>,
    %c0_13 = arith.constant 0 : index
    %c0_14 = arith.constant 0 : index
    %c0_15 = arith.constant 0 : index
    %21 = vector.load %arg5[%c0_13, %c0_14, %c0_15] : memref<1x8x128xf32, #tpu.memory_space<vmem>>, vector<1x8x128xf32>
    tpu.vector_store %arg5[%c0_13, %c0_14, %c0_15], %18 {strides = array<i32>} : memref<1x8x128xf32, #tpu.memory_space<vmem>>, vector<1x8x128xf32>,
    return
  }
  func.func @transform_0(%arg0: i32, %arg1: i32) -> (i32, i32, i32) {
    %c0_i32 = arith.constant 0 : i32
    %c0_i32_0 = arith.constant 0 : i32
    return %arg0, %arg1, %c0_i32 : i32, i32, i32
  }
  func.func @transform_1(%arg0: i32, %arg1: i32) -> (i32, i32, i32) {
    %c0_i32 = arith.constant 0 : i32
    %c0_i32_0 = arith.constant 0 : i32
    %c0_i32_1 = arith.constant 0 : i32
    return %arg0, %c0_i32, %c0_i32_0 : i32, i32, i32
  }
  func.func @transform_2(%arg0: i32, %arg1: i32) -> (i32, i32, i32) {
    %c0_i32 = arith.constant 0 : i32
    %c0_i32_0 = arith.constant 0 : i32
    return %arg0, %arg1, %c0_i32 : i32, i32, i32
  }
  func.func @transform_3(%arg0: i32, %arg1: i32) -> (i32, i32, i32) {
    %c0_i32 = arith.constant 0 : i32
    %c0_i32_0 = arith.constant 0 : i32
    return %arg0, %arg1, %c0_i32 : i32, i32, i32
  }
}

</mosaic_0001>

<bundles_post_ra>
// kernel: tpu_custom_call.1
= control target key start
LH: loop header
LB: loop body
LE: loop exit
PB: predicated region body
PF: predicated region fallthrough
CT: control target
= control target key end

     0   :  { %9 = vsyncpa [#allocation3], 0  ;;  %s1292_s0 = inlined_call_operand.hbm [shape: f32[2,8,128], index: 0, kind: input, shape index: {}]   ;;  %s1293_s1 = inlined_call_operand.hbm [shape: f32[2,128,128], index: 1, kind: input, shape index: {}]   ;;  %s1294_s2 = inlined_call_operand.hbm [shape: f32[2,8,128], index: 2, kind: output, shape index: {0}]   ;;  %s1295_s3 = inlined_call_operand.hbm [shape: f32[2,8,128], index: 3, kind: output, shape index: {1}]  }
   0x1   :  { %11 = vsyncpa [#allocation3 + $0x1], 0 }
   0x2   :  { %12 = vsyncpa [#allocation6], 0 }
   0x3   :  { %13 = vsyncpa [#allocation4], 0 }
   0x4   :  { %15 = vsyncpa [#allocation4 + $0x1], 0 }
   0x5   :  { %16 = vsyncpa [#allocation9], 0 }
   0x6   :  { %18 = vsyncpa [#allocation9 + $0x1], 0  ;;  %s1034_s12 = smov 0   ;;  %s1036_s13 = smov 0  }
   0x7   :  { %s1038_s14 = smov 0   ;;  %s1040_s15 = smov 0  }
   0x8   :  { %s1042_s16 = smov 0   ;;  %s1044_s17 = smov 0  }
   0x9 LB: > { %s571_s18 = sadd.s32 4294967295, %s1003_s17   ;;  %s572_s19 = sadd.s32 4294967294, %s1003_s17   ;;  %s1003_s17 = sphi %s1044_s17, %s24_s17   ;;  %s999_s16 = sphi %s1042_s16, %s1314_s16   ;;  %s995_s15 = sphi %s1040_s15, %s1313_s15   ;;  %s991_s14 = sphi %s1038_s14, %s1312_s14   ;;  %s987_s13 = sphi %s1036_s13, %s1311_s13   ;;  %s983_s12 = sphi %s1034_s12, %s1310_s12  }
   0xa   : > { %p58_p0 = scmp.ne.s32.totalorder %s987_s13, %s983_s12  ;;  %p59_p1 = scmp.eq.s32.totalorder %s571_s18, 0 }
   0xb   : > { %p116_p2 = scmp.eq.s32.totalorder %s572_s19, 1  ;;  %p573_p3 = scmp.ge.s32.totalorder %s1003_s17, 1 }
   0xc   : > { %p1071_p4 = por %p59_p1, %p58_p0  ;;  %p151_p5 = scmp.lt.s32.totalorder %s1003_s17, 3 }
   0xd   : > { %p1076_p6 = por %p116_p2, %p58_p0  ;;  %s589_s22 = sshll.u32 %s995_s15, 11 }
   0xe   : > { %s1299_s20 = scalar_select %p1071_p4, 1, 0 }
   0xf   : > { %s1300_s21 = scalar_select %p1076_p6, 1, 0 }
  0x10   : > { %p1081_p7 = pnand %p573_p3, %p151_p5  ;;  %s1088_s26 = scalar_lea.hbm %s1293_s1, %s589_s22 }
  0x11   : > { %s1005_s27 = smov [#allocation5]   ;;  %s825_s30 = scalar_lea.hbm %s1088_s26, 2048 }
  0x12   : > { %s1301_s23 = scalar_select %p1081_p7, 1, 0 }
  0x13   : > { %p750_p8 = pneg %p1081_p7  ;;  %s166_s28 = sshll.u32 %s1005_s27, 4  ;;  %s1092_s28 = int_to_ptr.vmem [resolvable:$true] %s166_s28 }
  0x14   : > { %p826_p11 = scmp.ne.s32.totalorder %s1088_s26, %s825_s30  ;;  %s830_s6 = scalar_lea.hbm %s1293_s1, 4096 }
  0x15   : > { %p1096_p9 = pnand %p750_p8, %p1071_p4  ;;  %p831_p1 = scmp.lt.u32.totalorder %s1088_s26, %s1293_s1 }
  0x16   : > { %p832_p2 = scmp.lt.u32.totalorder %s830_s6, %s825_s30  ;;  %p834_p5 = scmp.lt.u32.totalorder %s825_s30, %s1088_s26 }
  0x17   : > { %p827_p12 = pneg %p1096_p9 }
  0x18   : > { %p833_p3 = por %p832_p2, %p831_p1 }
  0x19   : > { %p828_p13 = pnand %p827_p12, %p826_p11 }
  0x1a   : > { %p835_p8 = por %p834_p5, %p833_p3 }
  0x1b   : > { %p829_p0 = pneg %p828_p13 }
  0x1d   : > { %p836_p10 = pnand %p835_p8, %p829_p0 }
  0x1f   : > { %839 = shalt.err (!%p836_p10)
}
  0x20   : > { %s840_s9 = scalar_lea.vmem %s1092_s28, 2048  ;;  %p848_p4 = scmp.lt.s32.totalorder %s1092_s28, %s1092_s28 }
  0x21   : > { %p841_p11 = scmp.ne.s32.totalorder %s1092_s28, %s840_s9  ;;  %p849_p7 = scmp.lt.s32.totalorder %s840_s9, %s840_s9 }
  0x23   : > { %p843_p13 = pnand %p841_p11, %p827_p12  ;;  %p850_p1 = por %p849_p7, %p848_p4 }
  0x25   : > { %p844_p6 = pneg %p843_p13 }
  0x27   : > { %p851_p2 = pnand %p850_p1, %p844_p6 }
  0x29   : > { %854 = shalt.err (!%p851_p2)
}
  0x2a   : > { %s1006_s10 = smov 128   ;;  %s1007_s11 = smov 8  }
  0x2b   : > { %753 = dma.hbm_to_vmem [thread:$0]  (!%p1096_p9), %s1088_s26, 2048, %s1092_s28, [#allocation6], %s1006_s10, %s1006_s10, %s1007_s11  }
  0x2c   : > { %s36_s19 = sadd.s32 1, %s999_s16  ;;  %s45_s22 = sadd.s32 1, %s991_s14 }
  0x2d   : > { %p38_p4 = scmp.ge.s32.totalorder %s36_s19, 2  ;;  %p52_p6 = scmp.ne.s32.totalorder %s991_s14, %s987_s13 }
  0x2e   : > { %p53_p7 = scmp.eq.s32.totalorder %s1003_s17, 0  ;;  %p110_p12 = scmp.eq.s32.totalorder %s571_s18, 1 }
  0x2f   : > { %s1316_s19 = smov (%p38_p4, %s36_s19), 0  ;;  %p765_p0 = scmp.lt.s32.totalorder %s1003_s17, 2 }
  0x30   : > { %p1134_p10 = por %p53_p7, %p52_p6  ;;  %s40_s25 = ssub.s32 %s999_s16, %s1316_s19 }
  0x31   : > { %p43_p3 = scmp.eq.s32.totalorder %s40_s25, 0  ;;  %p1143_p5 = por %p110_p12, %p52_p6 }
  0x32   : > { %s180_s27 = sand.u32 1, %s991_s14   ;;  %s578_s28 = sshll.u32 %s999_s16, 7 }
  0x33   : > { %s1150_s29 = scalar_select %p43_p3, %s991_s14, %s45_s22  }
  0x34   : > { %s577_s30 = sshll.u32 %s180_s27, 3  ;;  %s1155_s6 = scalar_lea.hbm %s1292_s0, %s578_s28 }
  0x35   : > { %s184_s18 = scalar_lea.vmem [#allocation2], %s577_s30  ;;  %p1159_p9 = pnand %p765_p0, %p1134_p10 }
  0x36   : > { %s192_s7 = sshll.u32 %s184_s18, 4  ;;  %s181_s9 = scalar_lea.sflag [#allocation3], %s180_s27  ;;  %s1163_s7 = int_to_ptr.vmem [resolvable:$true] %s192_s7 }
  0x37   : > { %s855_s10 = scalar_lea.hbm %s1155_s6, 128  ;;  %p857_p11 = pneg %p1159_p9 }
  0x38   : > { %p856_p8 = scmp.ne.s32.totalorder %s1155_s6, %s855_s10  ;;  %s860_s24 = scalar_lea.hbm %s1292_s0, 256 }
  0x39   : > { %p861_p2 = scmp.lt.u32.totalorder %s1155_s6, %s1292_s0  ;;  %p862_p4 = scmp.lt.u32.totalorder %s860_s24, %s855_s10 }
  0x3a   : > { %p858_p13 = pnand %p857_p11, %p856_p8  ;;  %p864_p7 = scmp.lt.u32.totalorder %s855_s10, %s1155_s6 }
  0x3b   : > { %p863_p6 = por %p862_p4, %p861_p2 }
  0x3c   : > { %p859_p1 = pneg %p858_p13 }
  0x3d   : > { %p865_p10 = por %p864_p7, %p863_p6 }
  0x3f   : > { %p866_p12 = pnand %p865_p10, %p859_p1 }
  0x41   : > { %869 = shalt.err (!%p866_p12)
}
  0x42   : > { %s870_s27 = scalar_lea.vmem %s1163_s7, 128  ;;  %s1008_s30 = smov [#allocation2]  }
  0x43   : > { %p871_p0 = scmp.ne.s32.totalorder %s1163_s7, %s870_s27  ;;  %s875_s4 = sshll.u32 %s1008_s30, 4  ;;  %s876_s4 = int_to_ptr.vmem [resolvable:$false] %s875_s4 }
  0x44   : > { %s877_s5 = scalar_lea.vmem %s876_s4, 256  ;;  %p878_p13 = scmp.lt.s32.totalorder %s1163_s7, %s876_s4 }
  0x45   : > { %p873_p3 = pnand %p871_p0, %p857_p11  ;;  %p879_p2 = scmp.lt.s32.totalorder %s877_s5, %s870_s27 }
  0x47   : > { %p874_p8 = pneg %p873_p3  ;;  %p880_p4 = por %p879_p2, %p878_p13 }
  0x49   : > { %p881_p6 = pnand %p880_p4, %p874_p8 }
  0x4b   : > { %884 = shalt.err (!%p881_p6)
}
  0x4c   : > { %757 = dma.hbm_to_vmem [thread:$0]  (!%p1159_p9), %s1155_s6, 128, %s1163_s7, %s181_s9  }
  0x4d   : > { %p1306_p1 = scmp.ne.s32.totalorder %s1301_s23, 0 }
  0x4e   : > { %s1193_s18 = sand.u32 (!%p1306_p1), 1, %s987_s13   ;;  %p1307_p11 = scmp.ne.s32.totalorder (!%p1306_p1), %s1299_s20, 0 }
  0x4f   : > { %201 = sbr.rel (%p1306_p1) target bundleno = 907 (0x38b), region = 28  ;;  %s1196_s10 = sshll.u32 (!%p1306_p1), %s1193_s18, 3 }
  0x50   : > { %s204_s11 = scalar_lea.sflag (!%p1306_p1), [#allocation3], %s1193_s18  ;;  %s207_s22 = scalar_lea.vmem (!%p1306_p1), [#allocation2], %s1196_s10 }
  0x56   : > { %966 = dma.done.wait (%p1307_p11), %s204_s11, 128  }
  0x57   : > { %968 = vsyncadd (%p1307_p11), %s204_s11, 4294967168 }
  0x58   : > { %970 = dma.done.wait (%p1307_p11), [#allocation6], 2048  }
  0x59   : > { %972 = vsyncadd (%p1307_p11), [#allocation6], 4294965248  ;;  %v1009_v0 = vmov 0.0|0.0   ;;  %vm1010_vm0 = vmmov 0   ;;  %v1011_v1 = vmov 0.0   ;;  %v240_v2 = vld [vmem:[#allocation5] sm:$0xff]  ;;  %v326_v27 = vlaneseq }
  0x5a   : > { %694 = vmatprep.subr.bf16.mxu0 %v1009_v0  ;;  %656 = vmatprep.mubr.msk.f32.mxu0 %vm1010_vm0, %v1011_v1  ;;  %v241_v3 = vld [vmem:[#allocation5 + $0x8] sm:$0xff]  ;;  %v242_v5 = vld [vmem:[#allocation5 + $0x10] sm:$0xff]  ;;  %v243_v6 = vld [vmem:[#allocation5 + $0x18] sm:$0xff]  ;;  %s238_s20 = scalar_lea.vmem [#allocation8], %s1196_s10  ;;  %s585_s23 = sshll.u32 %s995_s15, 7 }
  0x5b   : > { %718 = vmatprep.subr.bf16.mxu1 %v1009_v0  ;;  %691 = vmatprep.mubr.msk.f32.mxu1 %vm1010_vm0, %v1011_v1  ;;  %v695_v4 = vpack.c.bf16 %v241_v3, %v240_v2  ;;  %v698_v7 = vpack.c.bf16 %v243_v6, %v242_v5  ;;  %v244_v8 = vld [vmem:[#allocation5 + $0x20] sm:$0xff]  ;;  %v245_v9 = vld [vmem:[#allocation5 + $0x28] sm:$0xff]  ;;  %v246_v11 = vld [vmem:[#allocation5 + $0x30] sm:$0xff]  ;;  %v327_v28 = vand.u32 127, %v326_v27  ;;  %s1217_s8 = scalar_lea.hbm %s1295_s3, %s585_s23  ;;  %s446_s9 = sshll.u32 %s238_s20, 4  ;;  %s447_s9 = int_to_ptr.vmem [resolvable:$true] %s446_s9 }
  0x5c   : > { %v701_v10 = vpack.c.bf16 %v245_v9, %v244_v8  ;;  %v247_v12 = vld [vmem:[#allocation5 + $0x38] sm:$0xff]  ;;  %v248_v14 = vld [vmem:[#allocation5 + $0x40] sm:$0xff]  ;;  %v249_v15 = vld [vmem:[#allocation5 + $0x48] sm:$0xff]  ;;  %s418_s24 = scalar_lea.sflag [#allocation9], %s1193_s18  ;;  %s885_s25 = scalar_lea.vmem %s447_s9, 128 }
  0x5d   : > { %696 = vmatpush3.bf16.xpose.msra.mxu0 %v695_v4  ;;  %720 = vmatpush3.bf16.msra.mxu1 %v695_v4  ;;  %v704_v13 = vpack.c.bf16 %v247_v12, %v246_v11  ;;  %v707_v16 = vpack.c.bf16 %v249_v15, %v248_v14  ;;  %v250_v17 = vld [vmem:[#allocation5 + $0x50] sm:$0xff]  ;;  %v251_v18 = vld [vmem:[#allocation5 + $0x58] sm:$0xff]  ;;  %v252_v20 = vld [vmem:[#allocation5 + $0x60] sm:$0xff]  ;;  %vm328_vm1 = vcmp.lt.s32.totalorder %v327_v28, 8  ;;  %p886_p9 = scmp.ne.s32.totalorder %s447_s9, %s885_s25  ;;  %s1012_s28 = smov [#allocation8]  }
  0x5e   : > { %697 = vmatprep.subr.bf16.mxu0 %v1009_v0  ;;  %721 = vmatprep.subr.bf16.mxu1 %v1009_v0  ;;  %v710_v19 = vpack.c.bf16 %v251_v18, %v250_v17  ;;  %v253_v21 = vld [vmem:[#allocation5 + $0x68] sm:$0xff]  ;;  %v254_v23 = vld [vmem:[#allocation5 + $0x70] sm:$0xff]  ;;  %v255_v24 = vld [vmem:[#allocation5 + $0x78] sm:$0xff]  ;;  %s889_s27 = sshll.u32 %s1012_s28, 4  ;;  %s890_s27 = int_to_ptr.vmem [resolvable:$false] %s889_s27 }
  0x5f   : > { %v713_v22 = vpack.c.bf16 %v253_v21, %v252_v20  ;;  %v716_v25 = vpack.c.bf16 %v255_v24, %v254_v23  ;;  %v239_v26 = vld [vmem:[%s207_s22] sm:$0xff]  ;;  %p887_p7 = pnand %p886_p9, %p1143_p5  ;;  %s891_s30 = scalar_lea.vmem %s890_s27, 256 }
  0x60   : > { %p892_p12 = scmp.lt.s32.totalorder %s447_s9, %s890_s27  ;;  %p893_p0 = scmp.lt.s32.totalorder %s891_s30, %s885_s25 }
  0x61   : > { %723 = vmatpush3.bf16.msra.mxu1 %v698_v7  ;;  %p888_p10 = pneg %p887_p7 }
  0x62   : > { %724 = vmatprep.subr.bf16.mxu1 %v1009_v0  ;;  %p894_p3 = por %p893_p0, %p892_p12 }
  0x64   : > { %p895_p8 = pnand %p894_p3, %p888_p10 }
  0x65   : > { %699 = vmatpush3.bf16.xpose.msra.mxu0 %v698_v7  ;;  %726 = vmatpush3.bf16.msra.mxu1 %v701_v10 }
  0x66   : > { %700 = vmatprep.subr.bf16.mxu0 %v1009_v0  ;;  %727 = vmatprep.subr.bf16.mxu1 %v1009_v0 }
  0x69   : > { %729 = vmatpush3.bf16.msra.mxu1 %v704_v13 }
  0x6a   : > { %730 = vmatprep.subr.bf16.mxu1 %v1009_v0 }
  0x6d   : > { %702 = vmatpush3.bf16.xpose.msra.mxu0 %v701_v10  ;;  %732 = vmatpush3.bf16.msra.mxu1 %v707_v16 }
  0x6e   : > { %703 = vmatprep.subr.bf16.mxu0 %v1009_v0  ;;  %733 = vmatprep.subr.bf16.mxu1 %v1009_v0 }
  0x71   : > { %735 = vmatpush3.bf16.msra.mxu1 %v710_v19 }
  0x72   : > { %736 = vmatprep.subr.bf16.mxu1 %v1009_v0 }
  0x75   : > { %705 = vmatpush3.bf16.xpose.msra.mxu0 %v704_v13  ;;  %738 = vmatpush3.bf16.msra.mxu1 %v713_v22 }
  0x76   : > { %706 = vmatprep.subr.bf16.mxu0 %v1009_v0  ;;  %739 = vmatprep.subr.bf16.mxu1 %v1009_v0 }
  0x79   : > { %741 = vmatpush3.bf16.msra.mxu1 %v716_v25 }
  0x7d   : > { %708 = vmatpush3.bf16.xpose.msra.mxu0 %v707_v16 }
  0x7e   : > { %709 = vmatprep.subr.bf16.mxu0 %v1009_v0 }
  0x85   : > { %711 = vmatpush3.bf16.xpose.msra.mxu0 %v710_v19 }
  0x86   : > { %712 = vmatprep.subr.bf16.mxu0 %v1009_v0 }
  0x8d   : > { %714 = vmatpush3.bf16.xpose.msra.mxu0 %v713_v22 }
  0x8e   : > { %715 = vmatprep.subr.bf16.mxu0 %v1009_v0 }
  0x95   : > { %717 = vmatpush3.bf16.xpose.msra.mxu0 %v716_v25 }
  0x9c   : > { %657 = vmatmul.mubr.f32.vlgmr.msra.gmra.mrb[0].mxu0 %v239_v26 }
 0x16f   : > { %v322_v29 = vpop.f32.mrb[0].mxu0 }
 0x170   : > { %v658_v30 = vpop.f32.mrb[1].mxu0  ;;  %v329_v31 = vsel %vm328_vm1, %v322_v29, -inf }
 0x171   : > { %330 = vmax.xlane.f32.xlu0 %v329_v31 }
 0x1fe   : > { %v331_v32 = vpop.xlane.xlu0 %330 }
 0x1ff   : > { %v332_v33 = vsub.f32 %v329_v31, %v331_v32 }
 0x201   : > { %v333_v34 = vmul.f32 1.442695, %v332_v33 }
 0x203   : > { %821 = vpow2.f32 %v333_v34 }
 0x20d   : > { %v822_v35 = vpop.eup %821 }
 0x20e   : > { %335 = vadd.xlane.f32.xlu0 %v822_v35 }
 0x29b   : > { %v336_v36 = vpop.xlane.xlu0 %335 }
 0x29c   : > { %823 = vrcp.f32 %v336_v36 }
 0x2a6   : > { %v824_v37 = vpop.eup %823 }
 0x2a7   : > { %v339_v38 = vmul.f32 %v824_v37, %v822_v35 }
 0x2a9   : > { %692 = vmatmul.mubr.f32.vlgmr.msra.gmra.mrb[0].mxu1 %v339_v38  ;;  %411 = vst [vmem:[%s238_s20] sm:$0xff] %v339_v38 }
 0x2aa   : > { %898 = shalt.err (!%p895_p8)
}
 0x2ab   : > { %s899_s4 = scalar_lea.hbm %s1217_s8, 128  ;;  %s903_s22 = scalar_lea.hbm %s1295_s3, 256 }
 0x2ac   : > { %p900_p13 = scmp.ne.s32.totalorder %s1217_s8, %s899_s4  ;;  %p904_p6 = scmp.lt.u32.totalorder %s1217_s8, %s1295_s3 }
 0x2ad   : > { %p905_p1 = scmp.lt.u32.totalorder %s903_s22, %s899_s4  ;;  %p907_p9 = scmp.lt.u32.totalorder %s899_s4, %s1217_s8 }
 0x2ae   : > { %p901_p2 = pnand %p900_p13, %p1143_p5 }
 0x2af   : > { %p906_p11 = por %p905_p1, %p904_p6 }
 0x2b0   : > { %p902_p4 = pneg %p901_p2 }
 0x2b1   : > { %p908_p7 = por %p907_p9, %p906_p11 }
 0x2b3   : > { %p909_p10 = pnand %p908_p7, %p902_p4 }
 0x2b5   : > { %912 = shalt.err (!%p909_p10)
}
 0x2b6   : > { %747 = dma.vmem_to_hbm [thread:$0]  (%p1143_p5), %s447_s9, 128, %s1217_s8, %s418_s24  }
 0x2b7   : > { %s231_s7 = scalar_lea.vmem [#allocation7], %s1196_s10  ;;  %s1245_s30 = scalar_lea.hbm %s1294_s2, %s585_s23 }
 0x2b8   : > { %s432_s25 = sshll.u32 %s231_s7, 4  ;;  %s413_s4 = scalar_lea.sflag [#allocation4], %s1193_s18  ;;  %s1238_s25 = int_to_ptr.vmem [resolvable:$true] %s432_s25 }
 0x2b9   : > { %s913_s5 = scalar_lea.vmem %s1238_s25, 128  ;;  %s1013_s10 = smov [#allocation7]  }
 0x2ba   : > { %p914_p12 = scmp.ne.s32.totalorder %s1238_s25, %s913_s5  ;;  %s917_s8 = sshll.u32 %s1013_s10, 4  ;;  %s918_s8 = int_to_ptr.vmem [resolvable:$false] %s917_s8 }
 0x2bb   : > { %s919_s15 = scalar_lea.vmem %s918_s8, 256  ;;  %p920_p8 = scmp.lt.s32.totalorder %s1238_s25, %s918_s8 }
 0x2bc   : > { %p915_p0 = pnand %p914_p12, %p1143_p5  ;;  %p921_p13 = scmp.lt.s32.totalorder %s919_s15, %s913_s5 }
 0x2be   : > { %p916_p3 = pneg %p915_p0  ;;  %p922_p2 = por %p921_p13, %p920_p8 }
 0x2c0   : > { %p923_p4 = pnand %p922_p2, %p916_p3 }
 0x37c   : > { %v406_v39 = vpop.f32.mrb[0].mxu1 }
 0x37d   : > { %410 = vst [vmem:[%s231_s7] sm:$0xff] %v406_v39  ;;  %v693_v40 = vpop.f32.mrb[1].mxu1 }
 0x37e   : > { %926 = shalt.err (!%p923_p4)
}
 0x37f   : > { %s927_s18 = scalar_lea.hbm %s1245_s30, 128  ;;  %s931_s24 = scalar_lea.hbm %s1294_s2, 256 }
 0x380   : > { %p928_p6 = scmp.ne.s32.totalorder %s1245_s30, %s927_s18  ;;  %p932_p9 = scmp.lt.u32.totalorder %s1245_s30, %s1294_s2 }
 0x381   : > { %p933_p7 = scmp.lt.u32.totalorder %s931_s24, %s927_s18  ;;  %p935_p12 = scmp.lt.u32.totalorder %s927_s18, %s1245_s30 }
 0x382   : > { %p929_p1 = pnand %p928_p6, %p1143_p5 }
 0x383   : > { %p934_p10 = por %p933_p7, %p932_p9 }
 0x384   : > { %p930_p11 = pneg %p929_p1 }
 0x385   : > { %p936_p0 = por %p935_p12, %p934_p10 }
 0x387   : > { %p937_p3 = pnand %p936_p0, %p930_p11 }
 0x389   : > { %940 = shalt.err (!%p937_p3)
}
 0x38a   : > { %746 = dma.vmem_to_hbm [thread:$0]  (%p1143_p5), %s1238_s25, 128, %s1245_s30, %s413_s4  }
 0x38b PF: > { %s458_s20 = sand.u32 1, %s983_s12   ;;  %p1308_p8 = scmp.ne.s32.totalorder %s1300_s21, 0 }
 0x38c   : > { %p1309_p13 = scmp.ge.s32.totalorder %s1003_s17, 2  ;;  %s459_s6 = scalar_lea.sflag [#allocation4], %s458_s20 }
 0x38e   : > { %p759_p2 = pnand %p1309_p13, %p1308_p8 }
 0x390   : > { %974 = dma.done.wait (!%p759_p2), %s459_s6, 128  }
 0x391   : > { %976 = vsyncadd (!%p759_p2), %s459_s6, 4294967168  ;;  %s468_s7 = scalar_lea.sflag [#allocation9], %s458_s20 }
 0x392   : > { %978 = dma.done.wait (!%p759_p2), %s468_s7, 128  }
 0x393   : > { %980 = vsyncadd (!%p759_p2), %s468_s7, 4294967168  ;;  %s24_s17 = sadd.s32 1, %s1003_s17   ;;  %s1310_s12 = smov %s987_s13 }
 0x394   : > { %p21_p4 = scmp.ge.s32.totalorder %s24_s17, 4   ;;  %s1311_s13 = smov %s991_s14 }
 0x395   : > { %s1312_s14 = smov %s1150_s29  ;;  %s1313_s15 = smov %s999_s16 }
 0x396   : > { %s1314_s16 = smov %s1316_s19  ;;  %23 = sbr.rel (!%p21_p4) target bundleno = 9 (0x9), region = 95 }
 0x39d   :  { %473 = vsyncpa [#allocation3], 1 }
 0x39e   :  { %475 = vsyncpa [#allocation3 + $0x1], 1 }
 0x39f   :  { %476 = vsyncpa [#allocation6], 1 }
 0x3a0   :  { %477 = vsyncpa [#allocation4], 1 }
 0x3a1   :  { %479 = vsyncpa [#allocation4 + $0x1], 1 }
 0x3a2   :  { %480 = vsyncpa [#allocation9], 1 }
 0x3a3   :  { %482 = vsyncpa [#allocation9 + $0x1], 1 }

</bundles_post_ra>
